<compile_context>
chip_gen: v6e
topology: v6e:2x2x1
jax: 0.10.0
libtpu: 0.0.40
codegen_flags: <defaults>
</compile_context>

<pallas_src>
import jax
import jax.numpy as jnp
from jax.experimental import pallas as pl
from jax.experimental.pallas import tpu as pltpu

_LANE = 128
_MAX_TS = 256  # block = [9, 256, 128] f32 ≈ 1.2 MB/input; ~5-8 MB/step with double buffering


def _round_up(x, m):
    return ((x + m - 1) // m) * m


def _block_matrix_to_quaternion(m_ref):
    """m_ref: [9, TS, 128] block; rows = m00,m01,m02,m10,m11,m12,m20,m21,m22 (row-major 3x3).

    Returns (w, x, y, z), each [TS, 128] (pytorch3d matrix_to_quaternion semantics)."""
    m00 = m_ref[0]; m01 = m_ref[1]; m02 = m_ref[2]
    m10 = m_ref[3]; m11 = m_ref[4]; m12 = m_ref[5]
    m20 = m_ref[6]; m21 = m_ref[7]; m22 = m_ref[8]

    # Pre-sqrt traces: t_i = (2*q_i)^2.  sqrt is monotone, so argmax over t_i equals torch.argmax
    # over q_i = sqrt(max(t_i, 0)) whenever the winning trace is > 0 — always true for rotation
    # matrices (traces sum to 4 => max >= 1) and for zero-padded rows (t0 = 1).
    t0 = 1.0 + m00 + m11 + m22
    t1 = 1.0 + m00 - m11 - m22
    t2 = 1.0 - m00 + m11 - m22
    t3 = 1.0 - m00 - m11 + m22

    tmax = jnp.maximum(jnp.maximum(t0, t1), jnp.maximum(t2, t3))
    s0 = t0 >= tmax
    s1 = jnp.logical_and(t1 >= tmax, jnp.logical_not(s0))
    s2 = jnp.logical_and(t2 >= tmax, jnp.logical_not(jnp.logical_or(s0, s1)))

    def sel(v0, v1, v2, v3):
        return jnp.where(s0, v0, jnp.where(s1, v1, jnp.where(s2, v2, v3)))

    # One rsqrt per quaternion: 1/(2*max(q_sel, 0.1)) == 0.5 * rsqrt(max(t_sel, 0.01)) exactly.
    # One Newton-Raphson step on the VALU makes the result full-f32 accurate regardless of the
    # hardware rsqrt precision (arccos amplifies ~100x near |dot| -> 1).
    t_sel = jnp.maximum(sel(t0, t1, t2, t3), 0.01)
    r = jax.lax.rsqrt(t_sel)
    r = r * (1.5 - (0.5 * t_sel) * (r * r))
    inv = 0.5 * r

    # Hoisted off-diagonal sums/differences (reused across the sel() calls below).
    d_zy = m21 - m12
    d_xz = m02 - m20
    d_yx = m10 - m01
    s_yx = m10 + m01
    s_xz = m02 + m20
    s_zy = m12 + m21

    # Diagonal candidate value q_i*q_i == max(t_i, 0).
    w = sel(jnp.maximum(t0, 0.0), d_zy, d_xz, d_yx) * inv
    x = sel(d_zy, jnp.maximum(t1, 0.0), s_yx, s_xz) * inv
    y = sel(d_xz, s_yx, jnp.maximum(t2, 0.0), s_zy) * inv
    z = sel(d_yx, s_xz, s_zy, jnp.maximum(t3, 0.0)) * inv
    return w, x, y, z


def _acos_poly(x):
    """arccos(x) for x in [0, 1): sqrt(1-x) * poly(x), Abramowitz & Stegun 4.4.46, |err| <= 2e-8.

    One EUP sqrt (the EUP slot is otherwise idle after the rsqrt restructure) + 9 VALU ops."""
    p = -0.0012624911
    p = p * x + 0.0066700901
    p = p * x - 0.0170881256
    p = p * x + 0.0308918810
    p = p * x - 0.0501743046
    p = p * x + 0.0889789874
    p = p * x - 0.2145988016
    p = p * x + 1.5707963050
    return jnp.sqrt(jnp.maximum(1.0 - x, 0.0)) * p


def _pose_dist_kernel(a_ref, b_ref, o_ref):
    wa, xa, ya, za = _block_matrix_to_quaternion(a_ref)
    wb, xb, yb, zb = _block_matrix_to_quaternion(b_ref)
    dot = wa * wb + xa * xb + ya * yb + za * zb
    # torch.clamp(torch.abs(dot), max=0.9999), then distance = 2*arccos in-kernel.
    c = jnp.minimum(jnp.abs(dot), 0.9999)
    o_ref[...] = 2.0 * _acos_poly(c)


def pose_diff_loss(tensor_matrix_a, tensor_matrix_b):
    """tensor_matrix_a, tensor_matrix_b: [B, 3, 3] rotation matrices -> [B] distances in [0, pi]."""
    B = tensor_matrix_a.shape[0]

    # Number of 128-lane "rows" of batch elements; tile that sublane-row axis.
    s_rows = pl.cdiv(B, _LANE)
    if s_rows < 16:
        ts = s_rows                 # block == full (small) extent -> valid block shape
        s_pad = s_rows
    else:
        # Aim for ~4 steps, tile a multiple of 8 capped at _MAX_TS, and pad the row count so the
        # step count is EVEN and >= 2: overlapped DMA on all generations, balanced across v7x's
        # two TensorCores via the 'parallel' grid axis.
        ts = min(_MAX_TS, _round_up(pl.cdiv(s_rows, 4), 8))
        s_pad = _round_up(s_rows, 2 * ts)
    b_pad = s_pad * _LANE
    grid = (s_pad // ts,)

    # TODO(synk): producing inputs already in [9, S, 128] upstream would remove the transpose/pad
    # entirely; allow_input_fusion below lets XLA fuse it into the pallas_call operand instead of
    # a separate memory-bound launch.
    def _prep(m):
        m = jnp.transpose(m.reshape(B, 9).astype(jnp.float32))   # [9, B]
        m = jnp.pad(m, ((0, 0), (0, b_pad - B)))                 # zero pad is NaN-free in-kernel
        return m.reshape(9, s_pad, _LANE)

    a = _prep(tensor_matrix_a)
    b = _prep(tensor_matrix_b)

    dist = pl.pallas_call(
        _pose_dist_kernel,
        out_shape=jax.ShapeDtypeStruct((s_pad, _LANE), jnp.float32),
        grid=grid,
        in_specs=[
            pl.BlockSpec((9, ts, _LANE), lambda i: (0, i, 0)),
            pl.BlockSpec((9, ts, _LANE), lambda i: (0, i, 0)),
        ],
        out_specs=pl.BlockSpec((ts, _LANE), lambda i: (i, 0)),
        compiler_params=pltpu.CompilerParams(
            dimension_semantics=("parallel",),
            allow_input_fusion=[True, True],
        ),
    )(a, b)

    return dist.reshape(b_pad)[:B]


# ------------------------- pure-JAX reference + test harness -------------------------

def _sqrt_positive_part(x):
    return jnp.sqrt(jnp.maximum(x, 0.0))


def _matrix_to_quaternion_ref(mat):
    m = mat.reshape(-1, 9).astype(jnp.float32)
    m00, m01, m02, m10, m11, m12, m20, m21, m22 = [m[:, i] for i in range(9)]
    q0 = _sqrt_positive_part(1.0 + m00 + m11 + m22)
    q1 = _sqrt_positive_part(1.0 + m00 - m11 - m22)
    q2 = _sqrt_positive_part(1.0 - m00 + m11 - m22)
    q3 = _sqrt_positive_part(1.0 - m00 - m11 + m22)
    cands = jnp.stack(
        [
            jnp.stack([q0 * q0, m21 - m12, m02 - m20, m10 - m01], -1) / (2.0 * jnp.maximum(q0, 0.1))[:, None],
            jnp.stack([m21 - m12, q1 * q1, m10 + m01, m02 + m20], -1) / (2.0 * jnp.maximum(q1, 0.1))[:, None],
            jnp.stack([m02 - m20, m10 + m01, q2 * q2, m12 + m21], -1) / (2.0 * jnp.maximum(q2, 0.1))[:, None],
            jnp.stack([m10 - m01, m02 + m20, m12 + m21, q3 * q3], -1) / (2.0 * jnp.maximum(q3, 0.1))[:, None],
        ],
        axis=1,
    )  # [B, 4 candidates, 4 components]
    idx = jnp.argmax(jnp.stack([q0, q1, q2, q3], axis=-1), axis=-1)
    return jnp.take_along_axis(cands, idx[:, None, None], axis=1)[:, 0, :]


def _pose_diff_loss_ref(mat_a, mat_b):
    qa = _matrix_to_quaternion_ref(mat_a)
    qb = _matrix_to_quaternion_ref(mat_b)
    dot = jnp.sum(qa * qb, axis=-1)
    return 2.0 * jnp.arccos(jnp.minimum(jnp.abs(dot), 0.9999))


def _quat_to_rotmat(q):
    """q: [B, 4] unit quaternions (w, x, y, z) -> [B, 3, 3] rotation matrices."""
    w, x, y, z = q[:, 0], q[:, 1], q[:, 2], q[:, 3]
    rows = jnp.stack(
        [
            1 - 2 * (y * y + z * z), 2 * (x * y - z * w), 2 * (x * z + y * w),
            2 * (x * y + z * w), 1 - 2 * (x * x + z * z), 2 * (y * z - x * w),
            2 * (x * z - y * w), 2 * (y * z + x * w), 1 - 2 * (x * x + y * y),
        ],
        axis=-1,
    )
    return rows.reshape(-1, 3, 3)


if __name__ == "__main__":
    key = jax.random.PRNGKey(0)

    def make_batch(k, n):
        q = jax.random.normal(k, (n, 4), dtype=jnp.float32)
        q = q / jnp.linalg.norm(q, axis=-1, keepdims=True)
        return _quat_to_rotmat(q)

    # 8: single 128-lane row; 300: multiple sublane rows + partial-lane padding;
    # 4096: exercises the multi-step (even) grid / pipelined path (s_rows=32 -> 4 steps of 8).
    for bsz in (8, 300, 4096):
        ka, kb = jax.random.split(jax.random.fold_in(key, bsz))
        tensor_matrix_a = make_batch(ka, bsz)   # [B, 3, 3]
        tensor_matrix_b = make_batch(kb, bsz)   # [B, 3, 3]

        dist = pose_diff_loss(tensor_matrix_a, tensor_matrix_b)
        jax.block_until_ready(dist)

        ref = _pose_diff_loss_ref(tensor_matrix_a, tensor_matrix_b)
        assert dist.shape == (bsz,)
        assert jnp.allclose(dist, ref, atol=1e-3), (bsz, dist, ref)

    print("KERNEL_OK")
</pallas_src>

<mosaic_0001>
module attributes {stable_mosaic.version = 11 : i64} {
  func.func @_pose_dist_kernel(%arg0: i32, %arg1: memref<9x1x128xf32, #tpu.memory_space<vmem>>, %arg2: memref<9x1x128xf32, #tpu.memory_space<vmem>>, %arg3: memref<1x128xf32, #tpu.memory_space<vmem>>) attributes {dimension_semantics = [#tpu.dimension_semantics<parallel>], iteration_bounds = array<i64: 1>, scalar_prefetch = 0 : i64, scratch_operands = 0 : i64, tpu.core_type = #tpu.core_type<tc>, window_params = [{transform_indices = @transform_0, window_bounds = array<i64: 9, 1, 128>}, {transform_indices = @transform_1, window_bounds = array<i64: 9, 1, 128>}, {transform_indices = @transform_2, window_bounds = array<i64: 1, 128>}]} {
    %c0 = arith.constant 0 : index
    %c0_0 = arith.constant 0 : index
    %c0_1 = arith.constant 0 : index
    %0 = vector.load %arg1[%c0, %c0_0, %c0_1] : memref<9x1x128xf32, #tpu.memory_space<vmem>>, vector<1x1x128xf32>
    %1 = vector.shape_cast %0 : vector<1x1x128xf32> to vector<1x128xf32>
    %c1 = arith.constant 1 : index
    %c0_2 = arith.constant 0 : index
    %c0_3 = arith.constant 0 : index
    %2 = vector.load %arg1[%c1, %c0_2, %c0_3] : memref<9x1x128xf32, #tpu.memory_space<vmem>>, vector<1x1x128xf32>
    %3 = vector.shape_cast %2 : vector<1x1x128xf32> to vector<1x128xf32>
    %c2 = arith.constant 2 : index
    %c0_4 = arith.constant 0 : index
    %c0_5 = arith.constant 0 : index
    %4 = vector.load %arg1[%c2, %c0_4, %c0_5] : memref<9x1x128xf32, #tpu.memory_space<vmem>>, vector<1x1x128xf32>
    %5 = vector.shape_cast %4 : vector<1x1x128xf32> to vector<1x128xf32>
    %c3 = arith.constant 3 : index
    %c0_6 = arith.constant 0 : index
    %c0_7 = arith.constant 0 : index
    %6 = vector.load %arg1[%c3, %c0_6, %c0_7] : memref<9x1x128xf32, #tpu.memory_space<vmem>>, vector<1x1x128xf32>
    %7 = vector.shape_cast %6 : vector<1x1x128xf32> to vector<1x128xf32>
    %c4 = arith.constant 4 : index
    %c0_8 = arith.constant 0 : index
    %c0_9 = arith.constant 0 : index
    %8 = vector.load %arg1[%c4, %c0_8, %c0_9] : memref<9x1x128xf32, #tpu.memory_space<vmem>>, vector<1x1x128xf32>
    %9 = vector.shape_cast %8 : vector<1x1x128xf32> to vector<1x128xf32>
    %c5 = arith.constant 5 : index
    %c0_10 = arith.constant 0 : index
    %c0_11 = arith.constant 0 : index
    %10 = vector.load %arg1[%c5, %c0_10, %c0_11] : memref<9x1x128xf32, #tpu.memory_space<vmem>>, vector<1x1x128xf32>
    %11 = vector.shape_cast %10 : vector<1x1x128xf32> to vector<1x128xf32>
    %c6 = arith.constant 6 : index
    %c0_12 = arith.constant 0 : index
    %c0_13 = arith.constant 0 : index
    %12 = vector.load %arg1[%c6, %c0_12, %c0_13] : memref<9x1x128xf32, #tpu.memory_space<vmem>>, vector<1x1x128xf32>
    %13 = vector.shape_cast %12 : vector<1x1x128xf32> to vector<1x128xf32>
    %c7 = arith.constant 7 : index
    %c0_14 = arith.constant 0 : index
    %c0_15 = arith.constant 0 : index
    %14 = vector.load %arg1[%c7, %c0_14, %c0_15] : memref<9x1x128xf32, #tpu.memory_space<vmem>>, vector<1x1x128xf32>
    %15 = vector.shape_cast %14 : vector<1x1x128xf32> to vector<1x128xf32>
    %c8 = arith.constant 8 : index
    %c0_16 = arith.constant 0 : index
    %c0_17 = arith.constant 0 : index
    %16 = vector.load %arg1[%c8, %c0_16, %c0_17] : memref<9x1x128xf32, #tpu.memory_space<vmem>>, vector<1x1x128xf32>
    %17 = vector.shape_cast %16 : vector<1x1x128xf32> to vector<1x128xf32>
    %cst = arith.constant 1.000000e+00 : f32
    %18 = vector.broadcast %cst : f32 to vector<1x128xf32>
    %19 = arith.addf %18, %1 : vector<1x128xf32>
    %20 = arith.addf %19, %9 : vector<1x128xf32>
    %21 = arith.addf %20, %17 : vector<1x128xf32>
    %cst_18 = arith.constant 1.000000e+00 : f32
    %22 = vector.broadcast %cst_18 : f32 to vector<1x128xf32>
    %23 = arith.addf %22, %1 : vector<1x128xf32>
    %24 = arith.subf %23, %9 : vector<1x128xf32>
    %25 = arith.subf %24, %17 : vector<1x128xf32>
    %cst_19 = arith.constant 1.000000e+00 : f32
    %26 = vector.broadcast %cst_19 : f32 to vector<1x128xf32>
    %27 = arith.subf %26, %1 : vector<1x128xf32>
    %28 = arith.addf %27, %9 : vector<1x128xf32>
    %29 = arith.subf %28, %17 : vector<1x128xf32>
    %cst_20 = arith.constant 1.000000e+00 : f32
    %30 = vector.broadcast %cst_20 : f32 to vector<1x128xf32>
    %31 = arith.subf %30, %1 : vector<1x128xf32>
    %32 = arith.subf %31, %9 : vector<1x128xf32>
    %33 = arith.addf %32, %17 : vector<1x128xf32>
    %34 = arith.maximumf %21, %25 : vector<1x128xf32>
    %35 = arith.maximumf %29, %33 : vector<1x128xf32>
    %36 = arith.maximumf %34, %35 : vector<1x128xf32>
    %37 = arith.cmpf oge, %21, %36 : vector<1x128xf32>
    %38 = arith.cmpf oge, %25, %36 : vector<1x128xf32>
    %cst_21 = arith.constant dense<true> : vector<1x128xi1>
    %39 = arith.xori %37, %cst_21 : vector<1x128xi1>
    %40 = arith.andi %38, %39 : vector<1x128xi1>
    %41 = arith.cmpf oge, %29, %36 : vector<1x128xf32>
    %42 = arith.ori %37, %40 : vector<1x128xi1>
    %cst_22 = arith.constant dense<true> : vector<1x128xi1>
    %43 = arith.xori %42, %cst_22 : vector<1x128xi1>
    %44 = arith.andi %41, %43 : vector<1x128xi1>
    %45 = arith.select %44, %29, %33 : vector<1x128xi1>, vector<1x128xf32>
    %46 = arith.select %40, %25, %45 : vector<1x128xi1>, vector<1x128xf32>
    %47 = arith.select %37, %21, %46 : vector<1x128xi1>, vector<1x128xf32>
    %cst_23 = arith.constant 0.00999999977 : f32
    %48 = vector.broadcast %cst_23 : f32 to vector<1x128xf32>
    %49 = arith.maximumf %47, %48 : vector<1x128xf32>
    %50 = math.rsqrt %49 : vector<1x128xf32>
    %cst_24 = arith.constant 5.000000e-01 : f32
    %51 = vector.broadcast %cst_24 : f32 to vector<1x128xf32>
    %52 = arith.mulf %51, %49 : vector<1x128xf32>
    %53 = arith.mulf %50, %50 : vector<1x128xf32>
    %54 = arith.mulf %52, %53 : vector<1x128xf32>
    %cst_25 = arith.constant 1.500000e+00 : f32
    %55 = vector.broadcast %cst_25 : f32 to vector<1x128xf32>
    %56 = arith.subf %55, %54 : vector<1x128xf32>
    %57 = arith.mulf %50, %56 : vector<1x128xf32>
    %cst_26 = arith.constant 5.000000e-01 : f32
    %58 = vector.broadcast %cst_26 : f32 to vector<1x128xf32>
    %59 = arith.mulf %58, %57 : vector<1x128xf32>
    %60 = arith.subf %15, %11 : vector<1x128xf32>
    %61 = arith.subf %5, %13 : vector<1x128xf32>
    %62 = arith.subf %7, %3 : vector<1x128xf32>
    %63 = arith.addf %7, %3 : vector<1x128xf32>
    %64 = arith.addf %5, %13 : vector<1x128xf32>
    %65 = arith.addf %11, %15 : vector<1x128xf32>
    %cst_27 = arith.constant 0.000000e+00 : f32
    %66 = vector.broadcast %cst_27 : f32 to vector<1x128xf32>
    %67 = arith.maximumf %21, %66 : vector<1x128xf32>
    %68 = arith.select %44, %61, %62 : vector<1x128xi1>, vector<1x128xf32>
    %69 = arith.select %40, %60, %68 : vector<1x128xi1>, vector<1x128xf32>
    %70 = arith.select %37, %67, %69 : vector<1x128xi1>, vector<1x128xf32>
    %71 = arith.mulf %70, %59 : vector<1x128xf32>
    %cst_28 = arith.constant 0.000000e+00 : f32
    %72 = vector.broadcast %cst_28 : f32 to vector<1x128xf32>
    %73 = arith.maximumf %25, %72 : vector<1x128xf32>
    %74 = arith.select %44, %63, %64 : vector<1x128xi1>, vector<1x128xf32>
    %75 = arith.select %40, %73, %74 : vector<1x128xi1>, vector<1x128xf32>
    %76 = arith.select %37, %60, %75 : vector<1x128xi1>, vector<1x128xf32>
    %77 = arith.mulf %76, %59 : vector<1x128xf32>
    %cst_29 = arith.constant 0.000000e+00 : f32
    %78 = vector.broadcast %cst_29 : f32 to vector<1x128xf32>
    %79 = arith.maximumf %29, %78 : vector<1x128xf32>
    %80 = arith.select %44, %79, %65 : vector<1x128xi1>, vector<1x128xf32>
    %81 = arith.select %40, %63, %80 : vector<1x128xi1>, vector<1x128xf32>
    %82 = arith.select %37, %61, %81 : vector<1x128xi1>, vector<1x128xf32>
    %83 = arith.mulf %82, %59 : vector<1x128xf32>
    %cst_30 = arith.constant 0.000000e+00 : f32
    %84 = vector.broadcast %cst_30 : f32 to vector<1x128xf32>
    %85 = arith.maximumf %33, %84 : vector<1x128xf32>
    %86 = arith.select %44, %65, %85 : vector<1x128xi1>, vector<1x128xf32>
    %87 = arith.select %40, %64, %86 : vector<1x128xi1>, vector<1x128xf32>
    %88 = arith.select %37, %62, %87 : vector<1x128xi1>, vector<1x128xf32>
    %89 = arith.mulf %88, %59 : vector<1x128xf32>
    %c0_31 = arith.constant 0 : index
    %c0_32 = arith.constant 0 : index
    %c0_33 = arith.constant 0 : index
    %90 = vector.load %arg2[%c0_31, %c0_32, %c0_33] : memref<9x1x128xf32, #tpu.memory_space<vmem>>, vector<1x1x128xf32>
    %91 = vector.shape_cast %90 : vector<1x1x128xf32> to vector<1x128xf32>
    %c1_34 = arith.constant 1 : index
    %c0_35 = arith.constant 0 : index
    %c0_36 = arith.constant 0 : index
    %92 = vector.load %arg2[%c1_34, %c0_35, %c0_36] : memref<9x1x128xf32, #tpu.memory_space<vmem>>, vector<1x1x128xf32>
    %93 = vector.shape_cast %92 : vector<1x1x128xf32> to vector<1x128xf32>
    %c2_37 = arith.constant 2 : index
    %c0_38 = arith.constant 0 : index
    %c0_39 = arith.constant 0 : index
    %94 = vector.load %arg2[%c2_37, %c0_38, %c0_39] : memref<9x1x128xf32, #tpu.memory_space<vmem>>, vector<1x1x128xf32>
    %95 = vector.shape_cast %94 : vector<1x1x128xf32> to vector<1x128xf32>
    %c3_40 = arith.constant 3 : index
    %c0_41 = arith.constant 0 : index
    %c0_42 = arith.constant 0 : index
    %96 = vector.load %arg2[%c3_40, %c0_41, %c0_42] : memref<9x1x128xf32, #tpu.memory_space<vmem>>, vector<1x1x128xf32>
    %97 = vector.shape_cast %96 : vector<1x1x128xf32> to vector<1x128xf32>
    %c4_43 = arith.constant 4 : index
    %c0_44 = arith.constant 0 : index
    %c0_45 = arith.constant 0 : index
    %98 = vector.load %arg2[%c4_43, %c0_44, %c0_45] : memref<9x1x128xf32, #tpu.memory_space<vmem>>, vector<1x1x128xf32>
    %99 = vector.shape_cast %98 : vector<1x1x128xf32> to vector<1x128xf32>
    %c5_46 = arith.constant 5 : index
    %c0_47 = arith.constant 0 : index
    %c0_48 = arith.constant 0 : index
    %100 = vector.load %arg2[%c5_46, %c0_47, %c0_48] : memref<9x1x128xf32, #tpu.memory_space<vmem>>, vector<1x1x128xf32>
    %101 = vector.shape_cast %100 : vector<1x1x128xf32> to vector<1x128xf32>
    %c6_49 = arith.constant 6 : index
    %c0_50 = arith.constant 0 : index
    %c0_51 = arith.constant 0 : index
    %102 = vector.load %arg2[%c6_49, %c0_50, %c0_51] : memref<9x1x128xf32, #tpu.memory_space<vmem>>, vector<1x1x128xf32>
    %103 = vector.shape_cast %102 : vector<1x1x128xf32> to vector<1x128xf32>
    %c7_52 = arith.constant 7 : index
    %c0_53 = arith.constant 0 : index
    %c0_54 = arith.constant 0 : index
    %104 = vector.load %arg2[%c7_52, %c0_53, %c0_54] : memref<9x1x128xf32, #tpu.memory_space<vmem>>, vector<1x1x128xf32>
    %105 = vector.shape_cast %104 : vector<1x1x128xf32> to vector<1x128xf32>
    %c8_55 = arith.constant 8 : index
    %c0_56 = arith.constant 0 : index
    %c0_57 = arith.constant 0 : index
    %106 = vector.load %arg2[%c8_55, %c0_56, %c0_57] : memref<9x1x128xf32, #tpu.memory_space<vmem>>, vector<1x1x128xf32>
    %107 = vector.shape_cast %106 : vector<1x1x128xf32> to vector<1x128xf32>
    %cst_58 = arith.constant 1.000000e+00 : f32
    %108 = vector.broadcast %cst_58 : f32 to vector<1x128xf32>
    %109 = arith.addf %108, %91 : vector<1x128xf32>
    %110 = arith.addf %109, %99 : vector<1x128xf32>
    %111 = arith.addf %110, %107 : vector<1x128xf32>
    %cst_59 = arith.constant 1.000000e+00 : f32
    %112 = vector.broadcast %cst_59 : f32 to vector<1x128xf32>
    %113 = arith.addf %112, %91 : vector<1x128xf32>
    %114 = arith.subf %113, %99 : vector<1x128xf32>
    %115 = arith.subf %114, %107 : vector<1x128xf32>
    %cst_60 = arith.constant 1.000000e+00 : f32
    %116 = vector.broadcast %cst_60 : f32 to vector<1x128xf32>
    %117 = arith.subf %116, %91 : vector<1x128xf32>
    %118 = arith.addf %117, %99 : vector<1x128xf32>
    %119 = arith.subf %118, %107 : vector<1x128xf32>
    %cst_61 = arith.constant 1.000000e+00 : f32
    %120 = vector.broadcast %cst_61 : f32 to vector<1x128xf32>
    %121 = arith.subf %120, %91 : vector<1x128xf32>
    %122 = arith.subf %121, %99 : vector<1x128xf32>
    %123 = arith.addf %122, %107 : vector<1x128xf32>
    %124 = arith.maximumf %111, %115 : vector<1x128xf32>
    %125 = arith.maximumf %119, %123 : vector<1x128xf32>
    %126 = arith.maximumf %124, %125 : vector<1x128xf32>
    %127 = arith.cmpf oge, %111, %126 : vector<1x128xf32>
    %128 = arith.cmpf oge, %115, %126 : vector<1x128xf32>
    %cst_62 = arith.constant dense<true> : vector<1x128xi1>
    %129 = arith.xori %127, %cst_62 : vector<1x128xi1>
    %130 = arith.andi %128, %129 : vector<1x128xi1>
    %131 = arith.cmpf oge, %119, %126 : vector<1x128xf32>
    %132 = arith.ori %127, %130 : vector<1x128xi1>
    %cst_63 = arith.constant dense<true> : vector<1x128xi1>
    %133 = arith.xori %132, %cst_63 : vector<1x128xi1>
    %134 = arith.andi %131, %133 : vector<1x128xi1>
    %135 = arith.select %134, %119, %123 : vector<1x128xi1>, vector<1x128xf32>
    %136 = arith.select %130, %115, %135 : vector<1x128xi1>, vector<1x128xf32>
    %137 = arith.select %127, %111, %136 : vector<1x128xi1>, vector<1x128xf32>
    %cst_64 = arith.constant 0.00999999977 : f32
    %138 = vector.broadcast %cst_64 : f32 to vector<1x128xf32>
    %139 = arith.maximumf %137, %138 : vector<1x128xf32>
    %140 = math.rsqrt %139 : vector<1x128xf32>
    %cst_65 = arith.constant 5.000000e-01 : f32
    %141 = vector.broadcast %cst_65 : f32 to vector<1x128xf32>
    %142 = arith.mulf %141, %139 : vector<1x128xf32>
    %143 = arith.mulf %140, %140 : vector<1x128xf32>
    %144 = arith.mulf %142, %143 : vector<1x128xf32>
    %cst_66 = arith.constant 1.500000e+00 : f32
    %145 = vector.broadcast %cst_66 : f32 to vector<1x128xf32>
    %146 = arith.subf %145, %144 : vector<1x128xf32>
    %147 = arith.mulf %140, %146 : vector<1x128xf32>
    %cst_67 = arith.constant 5.000000e-01 : f32
    %148 = vector.broadcast %cst_67 : f32 to vector<1x128xf32>
    %149 = arith.mulf %148, %147 : vector<1x128xf32>
    %150 = arith.subf %105, %101 : vector<1x128xf32>
    %151 = arith.subf %95, %103 : vector<1x128xf32>
    %152 = arith.subf %97, %93 : vector<1x128xf32>
    %153 = arith.addf %97, %93 : vector<1x128xf32>
    %154 = arith.addf %95, %103 : vector<1x128xf32>
    %155 = arith.addf %101, %105 : vector<1x128xf32>
    %cst_68 = arith.constant 0.000000e+00 : f32
    %156 = vector.broadcast %cst_68 : f32 to vector<1x128xf32>
    %157 = arith.maximumf %111, %156 : vector<1x128xf32>
    %158 = arith.select %134, %151, %152 : vector<1x128xi1>, vector<1x128xf32>
    %159 = arith.select %130, %150, %158 : vector<1x128xi1>, vector<1x128xf32>
    %160 = arith.select %127, %157, %159 : vector<1x128xi1>, vector<1x128xf32>
    %161 = arith.mulf %160, %149 : vector<1x128xf32>
    %cst_69 = arith.constant 0.000000e+00 : f32
    %162 = vector.broadcast %cst_69 : f32 to vector<1x128xf32>
    %163 = arith.maximumf %115, %162 : vector<1x128xf32>
    %164 = arith.select %134, %153, %154 : vector<1x128xi1>, vector<1x128xf32>
    %165 = arith.select %130, %163, %164 : vector<1x128xi1>, vector<1x128xf32>
    %166 = arith.select %127, %150, %165 : vector<1x128xi1>, vector<1x128xf32>
    %167 = arith.mulf %166, %149 : vector<1x128xf32>
    %cst_70 = arith.constant 0.000000e+00 : f32
    %168 = vector.broadcast %cst_70 : f32 to vector<1x128xf32>
    %169 = arith.maximumf %119, %168 : vector<1x128xf32>
    %170 = arith.select %134, %169, %155 : vector<1x128xi1>, vector<1x128xf32>
    %171 = arith.select %130, %153, %170 : vector<1x128xi1>, vector<1x128xf32>
    %172 = arith.select %127, %151, %171 : vector<1x128xi1>, vector<1x128xf32>
    %173 = arith.mulf %172, %149 : vector<1x128xf32>
    %cst_71 = arith.constant 0.000000e+00 : f32
    %174 = vector.broadcast %cst_71 : f32 to vector<1x128xf32>
    %175 = arith.maximumf %123, %174 : vector<1x128xf32>
    %176 = arith.select %134, %155, %175 : vector<1x128xi1>, vector<1x128xf32>
    %177 = arith.select %130, %154, %176 : vector<1x128xi1>, vector<1x128xf32>
    %178 = arith.select %127, %152, %177 : vector<1x128xi1>, vector<1x128xf32>
    %179 = arith.mulf %178, %149 : vector<1x128xf32>
    %180 = arith.mulf %71, %161 : vector<1x128xf32>
    %181 = arith.mulf %77, %167 : vector<1x128xf32>
    %182 = arith.addf %180, %181 : vector<1x128xf32>
    %183 = arith.mulf %83, %173 : vector<1x128xf32>
    %184 = arith.addf %182, %183 : vector<1x128xf32>
    %185 = arith.mulf %89, %179 : vector<1x128xf32>
    %186 = arith.addf %184, %185 : vector<1x128xf32>
    %187 = math.absf %186 : vector<1x128xf32>
    %cst_72 = arith.constant 0.999899983 : f32
    %188 = vector.broadcast %cst_72 : f32 to vector<1x128xf32>
    %189 = arith.minimumf %187, %188 : vector<1x128xf32>
    %cst_73 = arith.constant -0.0012624911 : f32
    %190 = vector.broadcast %cst_73 : f32 to vector<1x128xf32>
    %191 = arith.mulf %190, %189 : vector<1x128xf32>
    %cst_74 = arith.constant 6.670090e-03 : f32
    %192 = vector.broadcast %cst_74 : f32 to vector<1x128xf32>
    %193 = arith.addf %191, %192 : vector<1x128xf32>
    %194 = arith.mulf %193, %189 : vector<1x128xf32>
    %cst_75 = arith.constant 0.0170881264 : f32
    %195 = vector.broadcast %cst_75 : f32 to vector<1x128xf32>
    %196 = arith.subf %194, %195 : vector<1x128xf32>
    %197 = arith.mulf %196, %189 : vector<1x128xf32>
    %cst_76 = arith.constant 0.0308918804 : f32
    %198 = vector.broadcast %cst_76 : f32 to vector<1x128xf32>
    %199 = arith.addf %197, %198 : vector<1x128xf32>
    %200 = arith.mulf %199, %189 : vector<1x128xf32>
    %cst_77 = arith.constant 0.0501743034 : f32
    %201 = vector.broadcast %cst_77 : f32 to vector<1x128xf32>
    %202 = arith.subf %200, %201 : vector<1x128xf32>
    %203 = arith.mulf %202, %189 : vector<1x128xf32>
    %cst_78 = arith.constant 0.0889789909 : f32
    %204 = vector.broadcast %cst_78 : f32 to vector<1x128xf32>
    %205 = arith.addf %203, %204 : vector<1x128xf32>
    %206 = arith.mulf %205, %189 : vector<1x128xf32>
    %cst_79 = arith.constant 0.214598805 : f32
    %207 = vector.broadcast %cst_79 : f32 to vector<1x128xf32>
    %208 = arith.subf %206, %207 : vector<1x128xf32>
    %209 = arith.mulf %208, %189 : vector<1x128xf32>
    %cst_80 = arith.constant 1.57079625 : f32
    %210 = vector.broadcast %cst_80 : f32 to vector<1x128xf32>
    %211 = arith.addf %209, %210 : vector<1x128xf32>
    %cst_81 = arith.constant 1.000000e+00 : f32
    %212 = vector.broadcast %cst_81 : f32 to vector<1x128xf32>
    %213 = arith.subf %212, %189 : vector<1x128xf32>
    %cst_82 = arith.constant 0.000000e+00 : f32
    %214 = vector.broadcast %cst_82 : f32 to vector<1x128xf32>
    %215 = arith.maximumf %213, %214 : vector<1x128xf32>
    %216 = math.sqrt %215 : vector<1x128xf32>
    %217 = arith.mulf %216, %211 : vector<1x128xf32>
    %cst_83 = arith.constant 2.000000e+00 : f32
    %218 = vector.broadcast %cst_83 : f32 to vector<1x128xf32>
    %219 = arith.mulf %218, %217 : vector<1x128xf32>
    %c0_84 = arith.constant 0 : index
    %c0_85 = arith.constant 0 : index
    %220 = vector.load %arg3[%c0_84, %c0_85] : memref<1x128xf32, #tpu.memory_space<vmem>>, vector<1x128xf32>
    tpu.vector_store %arg3[%c0_84, %c0_85], %219 {strides = array<i32>} : memref<1x128xf32, #tpu.memory_space<vmem>>, vector<1x128xf32>,
    return
  }
  func.func @transform_0(%arg0: i32) -> (i32, i32, i32) {
    %c0_i32 = arith.constant 0 : i32
    %c0_i32_0 = arith.constant 0 : i32
    %c0_i32_1 = arith.constant 0 : i32
    return %c0_i32, %arg0, %c0_i32_0 : i32, i32, i32
  }
  func.func @transform_1(%arg0: i32) -> (i32, i32, i32) {
    %c0_i32 = arith.constant 0 : i32
    %c0_i32_0 = arith.constant 0 : i32
    %c0_i32_1 = arith.constant 0 : i32
    return %c0_i32, %arg0, %c0_i32_0 : i32, i32, i32
  }
  func.func @transform_2(%arg0: i32) -> (i32, i32) {
    %c0_i32 = arith.constant 0 : i32
    %c0_i32_0 = arith.constant 0 : i32
    return %arg0, %c0_i32 : i32, i32
  }
}

</mosaic_0001>

<bundles_post_ra>
// kernel: tpu_custom_call.1
= control target key start
LH: loop header
LB: loop body
LE: loop exit
PB: predicated region body
PF: predicated region fallthrough
CT: control target
= control target key end

     0   :  { %7 = vsyncpa [#allocation3], 0  ;;  %s498_s0 = inlined_call_operand.hbm [shape: f32[9,1,128], index: 0, kind: input, shape index: {}]   ;;  %s499_s1 = inlined_call_operand.hbm [shape: f32[9,1,128], index: 1, kind: input, shape index: {}]   ;;  %s500_s2 = inlined_call_operand.hbm [shape: f32[1,128], index: 2, kind: output, shape index: {}]  }
   0x1   :  { %8 = vsyncpa [#allocation6], 0 }
   0x2   :  { %9 = vsyncpa [#allocation4], 0  ;;  %s322_s9 = smov [#allocation2]  }
   0x3   :  { %s15_s10 = sshll.u32 %s322_s9, 4  ;;  %s16_s10 = int_to_ptr.vmem [resolvable:$true] %s15_s10 }
   0x4   :  { %s264_s11 = scalar_lea.vmem %s16_s10, 144  ;;  %s268_s12 = scalar_lea.vmem %s16_s10, 160 }
   0x5   :  { %p265_p0 = scmp.ne.s32.totalorder %s16_s10, %s264_s11  ;;  %p269_p1 = scmp.lt.s32.totalorder %s16_s10, %s16_s10 }
   0x6   :  { %p270_p2 = scmp.lt.s32.totalorder %s268_s12, %s264_s11 }
   0x8   :  { %p271_p3 = por %p270_p2, %p269_p1 }
   0xa   :  { %p272_p4 = pnand %p271_p3, %p265_p0 }
   0xc   :  { %275 = shalt.err (!%p272_p4)
}
   0xd   :  { %s323_s13 = smov 16   ;;  %s324_s14 = smov 1  }
   0xe   :  { %21 = dma.hbm_to_vmem [thread:$0]  %s498_s0, 144, %s16_s10, [#allocation3], %s323_s13, %s323_s13, %s324_s14  }
   0xf   :  { %s325_s17 = smov [#allocation5]  }
  0x10   :  { %s27_s18 = sshll.u32 %s325_s17, 4  ;;  %s28_s18 = int_to_ptr.vmem [resolvable:$true] %s27_s18 }
  0x11   :  { %s284_s19 = scalar_lea.vmem %s28_s18, 144  ;;  %s288_s20 = scalar_lea.vmem %s28_s18, 160 }
  0x12   :  { %p285_p5 = scmp.ne.s32.totalorder %s28_s18, %s284_s19  ;;  %p289_p6 = scmp.lt.s32.totalorder %s28_s18, %s28_s18 }
  0x13   :  { %p290_p7 = scmp.lt.s32.totalorder %s288_s20, %s284_s19 }
  0x15   :  { %p291_p8 = por %p290_p7, %p289_p6 }
  0x17   :  { %p292_p9 = pnand %p291_p8, %p285_p5 }
  0x19   :  { %295 = shalt.err (!%p292_p9)
}
  0x1a   :  { %33 = dma.hbm_to_vmem [thread:$0]  %s499_s1, 144, %s28_s18, [#allocation6], %s323_s13, %s323_s13, %s324_s14  }
  0x1b   :  { %316 = dma.done.wait [#allocation3], 144  }
  0x1c   :  { %317 = vsyncadd [#allocation3], 4294967152 }
  0x1d   :  { %318 = dma.done.wait [#allocation6], 144  }
  0x1e   :  { %319 = vsyncadd [#allocation6], 4294967152  ;;  %v40_v0 = vld [vmem:[#allocation2] sm:$0x1]  ;;  %v48_v1 = vld [vmem:[#allocation2 + $0x4] sm:$0x1] }
  0x1f   :  { %v57_v2 = vadd.f32 1.0, %v40_v0  ;;  %v62_v3 = vsub.f32 1.0, %v40_v0  ;;  %v115_v4 = vld [vmem:[#allocation5] sm:$0x1]  ;;  %v56_v5 = vld [vmem:[#allocation2 + $0x8] sm:$0x1] }
  0x20   :  { %v123_v10 = vld [vmem:[#allocation5 + $0x4] sm:$0x1]  ;;  %v132_v11 = vadd.f32 1.0, %v115_v4  ;;  %v137_v12 = vsub.f32 1.0, %v115_v4  ;;  %v131_v17 = vld [vmem:[#allocation5 + $0x8] sm:$0x1] }
  0x21   :  { %v58_v6 = vadd.f32 %v57_v2, %v48_v1  ;;  %v60_v7 = vsub.f32 %v57_v2, %v48_v1  ;;  %v63_v8 = vadd.f32 %v62_v3, %v48_v1  ;;  %v65_v9 = vsub.f32 %v62_v3, %v48_v1  ;;  %v42_v46 = vld [vmem:[#allocation2 + $0x1] sm:$0x1]  ;;  %v44_v47 = vld [vmem:[#allocation2 + $0x2] sm:$0x1]  ;;  %v46_v48 = vld [vmem:[#allocation2 + $0x3] sm:$0x1] }
  0x22   :  { %v133_v18 = vadd.f32 %v132_v11, %v123_v10  ;;  %v135_v19 = vsub.f32 %v132_v11, %v123_v10  ;;  %v138_v20 = vadd.f32 %v137_v12, %v123_v10  ;;  %v140_v21 = vsub.f32 %v137_v12, %v123_v10  ;;  %v50_v49 = vld [vmem:[#allocation2 + $0x5] sm:$0x1]  ;;  %v52_v50 = vld [vmem:[#allocation2 + $0x6] sm:$0x1]  ;;  %v54_v51 = vld [vmem:[#allocation2 + $0x7] sm:$0x1] }
  0x23   :  { %v349_v13 = vadd.f32 %v58_v6, %v56_v5  ;;  %v351_v14 = vsub.f32 %v60_v7, %v56_v5  ;;  %v353_v15 = vsub.f32 %v63_v8, %v56_v5  ;;  %v355_v16 = vadd.f32 %v65_v9, %v56_v5  ;;  %v119_v52 = vld [vmem:[#allocation5 + $0x2] sm:$0x1]  ;;  %v127_v53 = vld [vmem:[#allocation5 + $0x6] sm:$0x1]  ;;  %v117_v56 = vld [vmem:[#allocation5 + $0x1] sm:$0x1] }
  0x24   :  { %v361_v24 = vadd.f32 %v133_v18, %v131_v17  ;;  %v363_v25 = vsub.f32 %v135_v19, %v131_v17  ;;  %v365_v27 = vsub.f32 %v138_v20, %v131_v17  ;;  %v367_v28 = vadd.f32 %v140_v21, %v131_v17  ;;  %v121_v57 = vld [vmem:[#allocation5 + $0x3] sm:$0x1]  ;;  %v125_v63 = vld [vmem:[#allocation5 + $0x5] sm:$0x1]  ;;  %v129_v0 = vld [vmem:[#allocation5 + $0x7] sm:$0x1] }
  0x25   :  { %v67_v22 = vmax.f32 %v349_v13, %v351_v14  ;;  %v68_v23 = vmax.f32 %v353_v15, %v355_v16  ;;  %vm326_vm2 = vmmov 1   ;;  %v91_v55 = vsub.f32 %v46_v48, %v42_v46  ;;  %s327_s0 = smov [#allocation7]  }
  0x26   :  { %v142_v29 = vmax.f32 %v361_v24, %v363_v25  ;;  %v143_v31 = vmax.f32 %v365_v27, %v367_v28  ;;  %v89_v59 = vsub.f32 %v54_v51, %v50_v49  ;;  %v90_v60 = vsub.f32 %v44_v47, %v52_v50  ;;  %s231_s1 = sshll.u32 %s327_s0, 4  ;;  %s232_s1 = int_to_ptr.vmem [resolvable:$true] %s231_s1 }
  0x27   :  { %v69_v26 = vmax.f32 %v67_v22, %v68_v23  ;;  %v92_v61 = vadd.f32 %v46_v48, %v42_v46  ;;  %v93_v62 = vadd.f32 %v52_v50, %v44_v47  ;;  %v94_v2 = vadd.f32 %v54_v51, %v50_v49  ;;  %s296_s23 = scalar_lea.vmem %s232_s1, 16  ;;  %s300_s24 = scalar_lea.vmem %s232_s1, 32 }
  0x28   :  { %v144_v33 = vmax.f32 %v142_v29, %v143_v31  ;;  %v105_v3 = vmax.f32 %v353_v15, 0.0  ;;  %v165_v4 = vsub.f32 %v119_v52, %v127_v53  ;;  %v110_v5 = vmax.f32 %v355_v16, 0.0  ;;  %p297_p10 = scmp.ne.s32.totalorder %s232_s1, %s296_s23  ;;  %p301_p11 = scmp.lt.s32.totalorder %s232_s1, %s232_s1 }
  0x29   :  { %vm372_vm0 = vcmp.ge.f32.partialorder %v349_v13, %v69_v26  ;;  %vm71_vm1 = vcmp.ge.f32.partialorder %v351_v14, %v69_v26  ;;  %vm74_vm5 = vcmp.ge.f32.partialorder %v353_v15, %v69_v26  ;;  %v166_v6 = vsub.f32 %v121_v57, %v117_v56  ;;  %p302_p12 = scmp.lt.s32.totalorder %s300_s24, %s296_s23 }
  0x2a   :  { %vm72_vm3 = vmxor %vm372_vm0, %vm326_vm2  ;;  %vm393_vm8 = vcmp.ge.f32.partialorder %v361_v24, %v144_v33  ;;  %vm146_vm9 = vcmp.ge.f32.partialorder %v363_v25, %v144_v33  ;;  %vm149_vm13 = vcmp.ge.f32.partialorder %v365_v27, %v144_v33  ;;  %v167_v7 = vadd.f32 %v121_v57, %v117_v56 }
  0x2b   :  { %vm382_vm4 = vmand %vm71_vm1, %vm72_vm3  ;;  %v168_v8 = vadd.f32 %v127_v53, %v119_v52  ;;  %v169_v10 = vadd.f32 %v129_v0, %v125_v63  ;;  %v180_v11 = vmax.f32 %v365_v27, 0.0  ;;  %v185_v12 = vmax.f32 %v367_v28, 0.0  ;;  %p303_p13 = por %p302_p12, %p301_p11 }
  0x2c   :  { %vm75_vm6 = vmor %vm372_vm0, %vm382_vm4  ;;  %v100_v17 = vmax.f32 %v351_v14, 0.0  ;;  %v164_v19 = vsub.f32 %v129_v0, %v125_v63  ;;  %v175_v20 = vmax.f32 %v363_v25, 0.0  ;;  %v95_v29 = vmax.f32 %v349_v13, 0.0 }
  0x2d   :  { %vm76_vm7 = vmxor %vm75_vm6, %vm326_vm2  ;;  %p304_p0 = pnand %p303_p13, %p297_p10 }
  0x2e   :  { %vm398_vm10 = vmand %vm74_vm5, %vm76_vm7 }
  0x2f   :  { %v78_v36 = vsel %vm398_vm10, %v353_v15, %v355_v16  ;;  %vm147_vm11 = vmxor %vm393_vm8, %vm326_vm2  ;;  %v96_v16 = vsel %vm398_vm10, %v90_v60, %v91_v55  ;;  %v101_v22 = vsel %vm398_vm10, %v92_v61, %v93_v62  ;;  %v106_v23 = vsel %vm398_vm10, %v105_v3, %v94_v2 }
  0x30   :  { %v79_v37 = vsel %vm382_vm4, %v351_v14, %v78_v36  ;;  %vm412_vm12 = vmand %vm146_vm9, %vm147_vm11  ;;  %v111_v26 = vsel %vm398_vm10, %v94_v2, %v110_v5  ;;  %v97_v35 = vsel %vm382_vm4, %v89_v59, %v96_v16  ;;  %v102_v36 = vsel %vm382_vm4, %v100_v17, %v101_v22 }
  0x31   :  { %v80_v39 = vsel %vm372_vm0, %v349_v13, %v79_v37  ;;  %vm150_vm14 = vmor %vm393_vm8, %vm412_vm12  ;;  %v107_v37 = vsel %vm382_vm4, %v92_v61, %v106_v23  ;;  %v170_v13 = vmax.f32 %v361_v24, 0.0  ;;  %v98_v32 = vsel %vm372_vm0, %v95_v29, %v97_v35 }
  0x32   :  { %v81_v40 = vmax.f32 %v80_v39, 0.01  ;;  %vm151_vm15 = vmxor %vm150_vm14, %vm326_vm2  ;;  %v108_v47 = vsel %vm372_vm0, %v90_v60, %v107_v37 }
  0x33   :  { %vm425_vm1 = vmand %vm149_vm13, %vm151_vm15 }
  0x34   :  { %250 = vrsqrt.f32 %v81_v40  ;;  %v153_v42 = vsel %vm425_vm1, %v365_v27, %v367_v28  ;;  %v83_v54 = vmul.f32 0.5, %v81_v40  ;;  %v171_v14 = vsel %vm425_vm1, %v165_v4, %v166_v6 }
  0x35   :  { %v154_v43 = vsel %vm412_vm12, %v363_v25, %v153_v42  ;;  %v176_v25 = vsel %vm425_vm1, %v167_v7, %v168_v8  ;;  %v181_v31 = vsel %vm425_vm1, %v180_v11, %v169_v10  ;;  %v186_v33 = vsel %vm425_vm1, %v169_v10, %v185_v12 }
  0x36   :  { %v155_v44 = vsel %vm393_vm8, %v361_v24, %v154_v43  ;;  %v112_v40 = vsel %vm382_vm4, %v93_v62, %v111_v26  ;;  %v172_v42 = vsel %vm412_vm12, %v164_v19, %v171_v14  ;;  %v177_v41 = vsel %vm412_vm12, %v175_v20, %v176_v25 }
  0x37   :  { %v156_v45 = vmax.f32 %v155_v44, 0.01  ;;  %v187_v46 = vsel %vm412_vm12, %v168_v8, %v186_v33  ;;  %v103_v24 = vsel %vm372_vm0, %v89_v59, %v102_v36  ;;  %v113_v48 = vsel %vm372_vm0, %v91_v55, %v112_v40 }
  0x38   :  { %v173_v50 = vsel %vm393_vm8, %v170_v13, %v172_v42  ;;  %v178_v38 = vsel %vm393_vm8, %v164_v19, %v177_v41  ;;  %v188_v52 = vsel %vm393_vm8, %v166_v6, %v187_v46 }
  0x39   :  { %252 = vrsqrt.f32 %v156_v45  ;;  %v158_v18 = vmul.f32 0.5, %v156_v45  ;;  %v182_v45 = vsel %vm412_vm12, %v167_v7, %v181_v31 }
  0x3a   :  { %v183_v51 = vsel %vm393_vm8, %v165_v4, %v182_v45 }
  0x41   :  { %v251_v58 = vpop.eup %250 }
  0x42   :  { %v84_v1 = vmul.f32 %v251_v58, %v251_v58 }
  0x44   :  { %v85_v9 = vmul.f32 %v84_v1, %v83_v54 }
  0x46   :  { %v253_v21 = vpop.eup %252  ;;  %v86_v15 = vsub.f32 1.5, %v85_v9 }
  0x47   :  { %v159_v27 = vmul.f32 %v253_v21, %v253_v21 }
  0x48   :  { %v87_v28 = vmul.f32 %v251_v58, %v86_v15 }
  0x49   :  { %v160_v39 = vmul.f32 %v159_v27, %v158_v18 }
  0x4a   :  { %v88_v43 = vmul.f32 0.5, %v87_v28 }
  0x4b   :  { %v161_v44 = vsub.f32 1.5, %v160_v39 }
  0x4c   :  { %v99_v53 = vmul.f32 %v98_v32, %v88_v43  ;;  %v104_v54 = vmul.f32 %v103_v24, %v88_v43  ;;  %v109_v56 = vmul.f32 %v108_v47, %v88_v43  ;;  %v114_v58 = vmul.f32 %v113_v48, %v88_v43 }
  0x4d   :  { %v162_v49 = vmul.f32 %v253_v21, %v161_v44 }
  0x4f   :  { %v163_v57 = vmul.f32 0.5, %v162_v49 }
  0x51   :  { %v174_v30 = vmul.f32 %v173_v50, %v163_v57  ;;  %v179_v55 = vmul.f32 %v178_v38, %v163_v57  ;;  %v184_v59 = vmul.f32 %v183_v51, %v163_v57  ;;  %v189_v60 = vmul.f32 %v188_v52, %v163_v57 }
  0x53   :  { %v190_v61 = vmul.f32 %v174_v30, %v99_v53  ;;  %v191_v62 = vmul.f32 %v179_v55, %v104_v54  ;;  %v193_v63 = vmul.f32 %v184_v59, %v109_v56  ;;  %v195_v1 = vmul.f32 %v189_v60, %v114_v58 }
  0x55   :  { %v192_v0 = vadd.f32 %v191_v62, %v190_v61 }
  0x57   :  { %v194_v2 = vadd.f32 %v193_v63, %v192_v0 }
  0x59   :  { %v196_v3 = vadd.f32 %v195_v1, %v194_v2 }
  0x5b   :  { %v197_v4 = vand.u32 2147483647, %v196_v3 }
  0x5d   :  { %v198_v5 = vmin.f32 %v197_v4, 0.9999 }
  0x5f   :  { %v199_v34 = vmul.f32 -0.0012624911, %v198_v5  ;;  %v213_v6 = vsub.f32 1.0, %v198_v5 }
  0x61   :  { %v200_v7 = vadd.f32 0.00667009, %v199_v34  ;;  %v214_v8 = vmax.f32 %v213_v6, 0.0 }
  0x63   :  { %v201_v9 = vmul.f32 %v200_v7, %v198_v5  ;;  %254 = vrsqrt.f32 %v214_v8  ;;  %vm217_vm0 = vcmp.eq.f32.partialorder %v214_v8, inf  ;;  %v220_v22 = vand.u32 2147483648, %v214_v8 }
  0x64   :  { %vm219_vm2 = vcmp.eq.f32.partialorder %v214_v8, 0.0 }
  0x65   :  { %v241_v10 = vadd.f32 -0.017088126, %v201_v9 }
  0x67   :  { %v203_v11 = vmul.f32 %v241_v10, %v198_v5 }
  0x69   :  { %v204_v12 = vadd.f32 0.03089188, %v203_v11 }
  0x6b   :  { %v205_v17 = vmul.f32 %v204_v12, %v198_v5 }
  0x6d   :  { %v242_v18 = vadd.f32 -0.050174303, %v205_v17 }
  0x6f   :  { %v207_v19 = vmul.f32 %v242_v18, %v198_v5 }
  0x70   :  { %v255_v20 = vpop.eup %254 }
  0x71   :  { %v208_v21 = vadd.f32 0.08897899, %v207_v19  ;;  %v216_v15 = vmul.f32 %v255_v20, %v214_v8 }
  0x73   :  { %v209_v16 = vmul.f32 %v208_v21, %v198_v5  ;;  %v218_v26 = vsel %vm217_vm0, %v214_v8, %v216_v15 }
  0x74   :  { %v221_v14 = vsel %vm219_vm2, %v220_v22, %v218_v26 }
  0x75   :  { %v243_v23 = vadd.f32 -0.2145988, %v209_v16 }
  0x77   :  { %v211_v27 = vmul.f32 %v243_v23, %v198_v5 }
  0x79   :  { %v212_v25 = vadd.f32 1.5707963, %v211_v27 }
  0x7b   :  { %v222_v28 = vmul.f32 %v221_v14, %v212_v25 }
  0x7d   :  { %v223_v29 = vmul.f32 2.0, %v222_v28 }
  0x7f   :  { %224 = vst [vmem:[#allocation7] sm:$0x1] %v223_v29 }
  0x80   :  { %307 = shalt.err (!%p304_p0)
}
  0x81   :  { %234 = dma.vmem_to_hbm [thread:$0]  %s232_s1, 16, %s500_s2, [#allocation4]  }
  0x82   :  { %320 = dma.done.wait [#allocation4], 16  }
  0x83   :  { %321 = vsyncadd [#allocation4], 4294967280 }
  0x84   :  { %238 = vsyncpa [#allocation3], 1 }
  0x85   :  { %239 = vsyncpa [#allocation6], 1 }
  0x86   :  { %240 = vsyncpa [#allocation4], 1 }

</bundles_post_ra>
